<compile_context>
chip_gen: v7x
topology: tpu7x:2x2x1
jax: 0.10.0
libtpu: 0.0.40
codegen_flags: <defaults>
</compile_context>

<pallas_src>
import jax
import jax.numpy as jnp
from jax.experimental import pallas as pl
from jax.experimental.pallas import tpu as pltpu


# ---------------------------------------------------------------------------
# Kernels
# ---------------------------------------------------------------------------
def _a_stencil_kernel_single(ls_ref, out_ref):
    """Single stencil.

    ls_ref  : (d,) float32 in SMEM (learned half-kernel, read as scalars)
    out_ref : (1, 1, 2*d + 1) in VMEM (final output shape, whole-array block)
    """
    d = ls_ref.shape[0]                       # static
    lane = jax.lax.broadcasted_iota(jnp.int32, out_ref.shape, 2)

    # Center tap; every other lane is filled (in registers) by the selects
    # below, so this never touches VMEM on its own.
    row = jnp.where(lane == d, 1.0, 0.0).astype(out_ref.dtype)

    # d is tiny and static -> unrolled compare/select chain (pure VALU work,
    # scalar SMEM reads broadcast into vregs). Same order as the PyTorch
    # concat: ls at lanes [0, d) and again at lanes [d+1, 2d+1).
    for i in range(d):
        row = jnp.where((lane == i) | (lane == d + 1 + i), ls_ref[i], row)

    out_ref[...] = row.astype(out_ref.dtype)  # single unmasked store


def _a_stencil_kernel_batched(ls_ref, out_ref):
    """B stencils in one launch.

    ls_ref  : (B, d) in VMEM
    out_ref : (B, 2*d + 1) in VMEM (whole-array block)
    """
    d = ls_ref.shape[-1]                      # static
    lane = jax.lax.broadcasted_iota(jnp.int32, out_ref.shape, 1)

    row = jnp.where(lane == d, 1.0, 0.0).astype(out_ref.dtype)
    for i in range(d):
        tap = ls_ref[:, i:i + 1]              # (B, 1) static slice, lane-broadcast
        row = jnp.where((lane == i) | (lane == d + 1 + i), tap, row)

    out_ref[...] = row.astype(out_ref.dtype)  # single store for the whole batch


# ---------------------------------------------------------------------------
# Wrappers
# ---------------------------------------------------------------------------
def a_estimator_forward(ls, kernel_size, dtype=jnp.float32):
    """Pallas implementation of A_estimator.forward().

    ls      : (d,) parameter array, d = (kernel_size - 1) // 2
    returns : (1, 1, kernel_size) array
    """
    if kernel_size == 0:
        # torch.tensor([0], dtype=ttype).reshape(1, 1, 1)
        return jnp.zeros((1, 1, 1), dtype=dtype)
    if kernel_size % 2 != 1:
        raise ValueError(
            f"kernel_size must be odd (or 0), got {kernel_size}")

    d = (kernel_size - 1) // 2
    if d == 0:
        # kernel_size == 1: output is just the center tap [1.0].
        return jnp.ones((1, 1, 1), dtype=dtype)

    if ls.shape != (d,):
        raise ValueError(f"ls must have shape ({d},), got {ls.shape}")

    # SMEM holds 32-bit words; keep the half-kernel in f32 there (no-op for
    # the default f32 parameters, so normally no extra wrapper op at all).
    ls32 = ls if ls.dtype == jnp.float32 else ls.astype(jnp.float32)

    return pl.pallas_call(
        _a_stencil_kernel_single,
        out_shape=jax.ShapeDtypeStruct((1, 1, kernel_size), dtype),
        in_specs=[pl.BlockSpec(memory_space=pltpu.MemorySpace.SMEM)],
        out_specs=pl.BlockSpec(memory_space=pltpu.MemorySpace.VMEM),
    )(ls32)


def a_estimator_forward_batched(ls_all, kernel_size, dtype=jnp.float32):
    """Build B stencils in one launch (amortizes per-call dispatch cost).

    ls_all  : (B, d) stacked half-kernels
    returns : (B, kernel_size)
    """
    if kernel_size == 0:
        return jnp.zeros((ls_all.shape[0], 1), dtype=dtype)
    if kernel_size % 2 != 1:
        raise ValueError(
            f"kernel_size must be odd (or 0), got {kernel_size}")

    d = (kernel_size - 1) // 2
    B = ls_all.shape[0]
    if d == 0:
        return jnp.ones((B, 1), dtype=dtype)
    if ls_all.shape != (B, d):
        raise ValueError(f"ls_all must have shape ({B}, {d}), got {ls_all.shape}")

    ls_in = ls_all if ls_all.dtype == dtype else ls_all.astype(dtype)

    return pl.pallas_call(
        _a_stencil_kernel_batched,
        out_shape=jax.ShapeDtypeStruct((B, kernel_size), dtype),
        in_specs=[pl.BlockSpec(memory_space=pltpu.MemorySpace.VMEM)],
        out_specs=pl.BlockSpec(memory_space=pltpu.MemorySpace.VMEM),
    )(ls_in)


def a_estimator_reference(ls, kernel_size, dtype=jnp.float32):
    """Pure-JAX reference mirroring the PyTorch forward."""
    if kernel_size == 0:
        return jnp.zeros((1, 1, 1), dtype=dtype)
    one = jnp.ones((1,), dtype=dtype)
    return jnp.concatenate([ls.astype(dtype), one, ls.astype(dtype)]).reshape(
        1, 1, kernel_size)


# ---------------------------------------------------------------------------
# Demo / self-test
# ---------------------------------------------------------------------------
if __name__ == "__main__":
    kernel_size = 3
    d = (kernel_size - 1) // 2

    key = jax.random.PRNGKey(0)
    k_ls, k_ls2, k_batch, k_x = jax.random.split(key, 4)

    # Deterministic parameter (PyTorch __init__ uses zeros; a small random
    # value makes the symmetric-stencil structure visible).
    ls = jax.random.normal(k_ls, (d,), jnp.float32)

    # The PyTorch forward ignores x; built only for shape parity.
    x = jax.random.normal(k_x, (2, 4, 16, 16), jnp.float32)
    del x  # unused, exactly like the reference module

    fwd = jax.jit(a_estimator_forward, static_argnums=(1,))

    out = jax.block_until_ready(fwd(ls, kernel_size))
    ref = a_estimator_reference(ls, kernel_size)
    assert out.shape == (1, 1, kernel_size), out.shape
    assert out.dtype == jnp.float32
    assert jnp.allclose(out, ref, atol=1e-7), (out, ref)

    # A larger odd kernel_size still matches.
    ks2 = 9
    ls2 = jax.random.normal(k_ls2, ((ks2 - 1) // 2,), jnp.float32)
    out2 = jax.block_until_ready(fwd(ls2, ks2))
    assert jnp.allclose(out2, a_estimator_reference(ls2, ks2), atol=1e-7)

    # Batched path: many stencils in a single launch.
    B = 8
    ls_all = jax.random.normal(k_batch, (B, (ks2 - 1) // 2), jnp.float32)
    fwd_b = jax.jit(a_estimator_forward_batched, static_argnums=(1,))
    out_b = jax.block_until_ready(fwd_b(ls_all, ks2))
    ref_b = jnp.stack(
        [a_estimator_reference(ls_all[b], ks2)[0, 0] for b in range(B)])
    assert out_b.shape == (B, ks2), out_b.shape
    assert jnp.allclose(out_b, ref_b, atol=1e-7)

    print("KERNEL_OK")
</pallas_src>

<mosaic_0001>
module attributes {stable_mosaic.version = 11 : i64} {
  func.func @_a_stencil_kernel_single(%arg0: memref<1xf32, #tpu.memory_space<smem>>, %arg1: memref<1x1x3xf32, #tpu.memory_space<vmem>>) attributes {dimension_semantics = [], scalar_prefetch = 0 : i64, scratch_operands = 0 : i64, tpu.core_type = #tpu.core_type<tc>} {
    %0 = tpu.iota {dimensions = array<i32: 2>} : vector<1x1x3xi32>
    %c1_i32 = arith.constant 1 : i32
    %1 = vector.broadcast %c1_i32 : i32 to vector<1x1x3xi32>
    %2 = arith.cmpi eq, %0, %1 : vector<1x1x3xi32>
    %cst = arith.constant 1.000000e+00 : f32
    %cst_0 = arith.constant 0.000000e+00 : f32
    %3 = vector.broadcast %cst : f32 to vector<1x1x3xf32>
    %4 = vector.broadcast %cst_0 : f32 to vector<1x1x3xf32>
    %5 = arith.select %2, %3, %4 : vector<1x1x3xi1>, vector<1x1x3xf32>
    %c0_i32 = arith.constant 0 : i32
    %6 = vector.broadcast %c0_i32 : i32 to vector<1x1x3xi32>
    %7 = arith.cmpi eq, %0, %6 : vector<1x1x3xi32>
    %c2_i32 = arith.constant 2 : i32
    %8 = vector.broadcast %c2_i32 : i32 to vector<1x1x3xi32>
    %9 = arith.cmpi eq, %0, %8 : vector<1x1x3xi32>
    %10 = arith.ori %7, %9 : vector<1x1x3xi1>
    %c0 = arith.constant 0 : index
    %11 = memref.load %arg0[%c0] : memref<1xf32, #tpu.memory_space<smem>>
    %12 = vector.broadcast %11 : f32 to vector<1x1x3xf32>
    %13 = arith.select %10, %12, %5 : vector<1x1x3xi1>, vector<1x1x3xf32>
    %c0_1 = arith.constant 0 : index
    %c0_2 = arith.constant 0 : index
    %c0_3 = arith.constant 0 : index
    %14 = vector.load %arg1[%c0_1, %c0_2, %c0_3] : memref<1x1x3xf32, #tpu.memory_space<vmem>>, vector<1x1x3xf32>
    tpu.vector_store %arg1[%c0_1, %c0_2, %c0_3], %13 {strides = array<i32>} : memref<1x1x3xf32, #tpu.memory_space<vmem>>, vector<1x1x3xf32>,
    return
  }
}

</mosaic_0001>

<bundles_post_ra>
// kernel: a_estimator_forward.1
= control target key start
LH: loop header
LB: loop body
LE: loop exit
PB: predicated region body
PF: predicated region fallthrough
CT: control target
= control target key end

     0   :  { %v10_v0 = vlaneseq  ;;  %s89_s0 = inlined_call_operand.<no memory space> [shape: f32[1], index: 0, kind: input, shape index: {}]   ;;  %s90_s1 = inlined_call_operand.hbm [shape: f32[1,1,3], index: 1, kind: output, shape index: {}]  }
   0x1   :  { %7 = vsyncpa [#allocation4], 0  ;;  %s62_s6 = smov [#allocation3]   ;;  %v18_v2 = vstv %s89_s0  ;;  %vm20_vm3 = vcmask 16384   ;;  %v63_v3 = vmov 0.0  }
   0x2   :  { %v11_v1 = vand.u32 127, %v10_v0  ;;  %s28_s7 = sshll.u32 %s62_s6, 4  ;;  %s29_s7 = int_to_ptr.vmem [resolvable:$true] %s28_s7 }
   0x3   :  { %s38_s10 = scalar_lea.vmem %s29_s7, 16  ;;  %s42_s11 = scalar_lea.vmem %s29_s7, 32 }
   0x4   :  { %vm12_vm0 = vcmp.eq.s32.totalorder %v11_v1, 1  ;;  %vm14_vm1 = vcmp.eq.s32.totalorder %v11_v1, 0  ;;  %vm15_vm2 = vcmp.eq.s32.totalorder %v11_v1, 2  ;;  %p39_p0 = scmp.ne.s32.totalorder %s29_s7, %s38_s10  ;;  %p43_p1 = scmp.lt.s32.totalorder %s29_s7, %s29_s7 }
   0x5   :  { %v13_v4 = vsel %vm12_vm0, 1.0, %v63_v3  ;;  %vm16_vm4 = vmor %vm14_vm1, %vm15_vm2  ;;  %p44_p2 = scmp.lt.s32.totalorder %s42_s11, %s38_s10 }
   0x6   :  { %v19_v5 = vsel %vm16_vm4, %v18_v2, %v13_v4 }
   0x7   :  { %21 = vst.msk [vmem:[#allocation3] sm:$0x1] %vm20_vm3, %v19_v5  ;;  %p45_p3 = por %p44_p2, %p43_p1 }
   0x9   :  { %p46_p4 = pnand %p45_p3, %p39_p0 }
   0xb   :  { %49 = shalt.err (!%p46_p4)
}
   0xc   :  { %s50_s13 = scalar_lea.hbm %s90_s1, 16 }
   0xd   :  { %p51_p5 = scmp.ne.s32.totalorder %s90_s1, %s50_s13  ;;  %p54_p6 = scmp.lt.u32.totalorder %s50_s13, %s90_s1 }
   0xf   :  { %p56_p7 = pnand %p54_p6, %p51_p5 }
  0x11   :  { %59 = shalt.err (!%p56_p7)
}
  0x12   :  { %31 = dma.vmem_to_hbm [thread:$0]  %s29_s7, 16, %s90_s1, [#allocation4]  }
  0x13   :  { %60 = dma.done.wait [#allocation4], 16  }
  0x14   :  { %61 = vsyncadd [#allocation4], 4294967280 }
  0x15   :  { %35 = vsyncpa [#allocation4], 1 }

</bundles_post_ra>
